<compile_context>
chip_gen: v6e
topology: v6e:2x2x1
jax: 0.10.0
libtpu: 0.0.40
codegen_flags: <defaults>
</compile_context>

<pallas_src>
import jax
import jax.numpy as jnp
from jax.experimental import pallas as pl
from jax.experimental.pallas import tpu as pltpu

N_SAMPLES = 4200            # matches torch.linspace(0, 1, 4200)
TOTAL = 2                   # sum of si['count'] in the reference module
LEAKY_SLOPE = 0.01          # nn.LeakyReLU() default negative_slope


def _round_up(v, m):
    return (v + m - 1) // m * m


# -----------------------------------------------------------------------------
# Fused Pallas kernel: [feature extraction folded into layer 1] -> full MLP
# -----------------------------------------------------------------------------
def ann_fused_kernel(x_ref, wf_ref, b1_ref, w2_ref, b2_ref, w3_ref, b3_ref, o_ref):
    # Layer 1 == (feature extraction + Linear(2,50)) folded into one (4200,50) matrix.
    # This is the only real HBM traffic; MXU in bf16 with f32 accumulation.
    xb = x_ref[...].astype(jnp.bfloat16)                                   # cheap VPU cast
    h = jnp.dot(xb, wf_ref[...], preferred_element_type=jnp.float32) + b1_ref[...]
    h = jnp.where(h >= 0, h, LEAKY_SLOPE * h)                              # LeakyReLU (f32 VPU)

    # Layer 2: Linear(50,10) — tiny; fine on the MXU for the row tile.
    h = jnp.dot(h, w2_ref[...], preferred_element_type=jnp.float32) + b2_ref[...]
    h = jnp.where(h >= 0, h, LEAKY_SLOPE * h)                              # LeakyReLU

    # Layer 3: Linear(10,1) as VPU multiply + lane reduction (keeps N=1 off the MXU).
    y = jnp.sum(h * w3_ref[...], axis=-1, keepdims=True) + b3_ref[...]     # (TB, 1)
    o_ref[...] = y


def ann_forward_pallas(x, fused_params, *, block_b=512):
    """x: (B, N_SAMPLES) float32 or bfloat16 -> (B,) float32."""
    wf, b1, w2, b2, w3, b3 = fused_params
    B, n = x.shape

    # Batch tile: multiple of 8 sublanes; default 512 fits scoped VMEM on all generations.
    tb = min(block_b, _round_up(B, 8))
    b_pad = _round_up(B, tb)
    if b_pad != B:
        x = jnp.pad(x, ((0, b_pad - B), (0, 0)))
    grid = (b_pad // tb,)

    const = lambda i: (0, 0)    # weights/biases: constant index_map -> stay VMEM-resident
    out = pl.pallas_call(
        ann_fused_kernel,
        out_shape=jax.ShapeDtypeStruct((b_pad, 1), jnp.float32),
        grid=grid,
        in_specs=[
            pl.BlockSpec((tb, n), lambda i: (i, 0)),   # x: pipelined over batch tiles
            pl.BlockSpec(wf.shape, const),             # fused (4200, 50) bf16 weight
            pl.BlockSpec(b1.shape, const),
            pl.BlockSpec(w2.shape, const),
            pl.BlockSpec(b2.shape, const),
            pl.BlockSpec(w3.shape, const),
            pl.BlockSpec(b3.shape, const),
        ],
        # Output last-dim is 1 (masked store); store bytes are ~0.02% of the x read, so a
        # lane-dense relayout of the batch dim would cost more than it saves here.
        out_specs=pl.BlockSpec((tb, 1), lambda i: (i, 0)),
        compiler_params=pltpu.CompilerParams(
            dimension_semantics=("parallel",),         # v7x: shard batch tiles over 2 TCs
            vmem_limit_bytes=32 * 1024 * 1024,         # TB=512 f32 x tile, double-buffered
        ),
    )(x, wf, b1, w2, b2, w3, b3)

    return out[:B, 0]                                  # == reshape(-1) on the valid rows


# -----------------------------------------------------------------------------
# Parameter init (shapes from nn.Linear(2,50), (50,10), (10,1)) and host-side fusion
# -----------------------------------------------------------------------------
def init_params(key):
    ks = jax.random.split(key, 6)

    def linear(kw, kb, fan_in, fan_out):
        bound = float(1.0 / (fan_in ** 0.5))
        # stored already transposed: (in, out); bias as (1, out) for 2D broadcast in-kernel
        w = jax.random.uniform(kw, (fan_in, fan_out), jnp.float32, -bound, bound)
        b = jax.random.uniform(kb, (1, fan_out), jnp.float32, -bound, bound)
        return w, b

    w1, b1 = linear(ks[0], ks[1], TOTAL, 50)
    w2, b2 = linear(ks[2], ks[3], 50, 10)
    w3, b3 = linear(ks[4], ks[5], 10, 1)
    return w1, b1, w2, b2, w3, b3


# TODO(synk): MNDI (and BI/DI/RI/NDI/SNDI) plus natural_cubic_spline_coeffs /
# NaturalCubicSpline are external, undefined symbols in the reference module; the exact
# spline-index features cannot be reproduced. Two deterministic *linear* summary
# statistics (mean and trapezoid integral over [0,1]) stand in for the 2 MNDI outputs,
# which lets the feature extraction be expressed as x @ W_feat and fused into layer 1.
def make_feature_weights(indices):
    n = indices.shape[0]
    mean_w = jnp.full((n,), 1.0 / n, jnp.float32)                 # "machine 0": mean
    dt = indices[1:] - indices[:-1]
    trap = jnp.zeros((n,), jnp.float32)
    trap = trap.at[:-1].add(0.5 * dt)                             # "machine 1": trapezoid
    trap = trap.at[1:].add(0.5 * dt)
    return jnp.stack([mean_w, trap], axis=1)                      # (n, TOTAL)


def fuse_params(params, indices):
    w1, b1, w2, b2, w3, b3 = params
    w_feat = make_feature_weights(indices)                        # (N, 2) f32
    # Fold feature extraction into layer 1 in f32, then cast once to bf16 for the MXU.
    w_fused = jnp.dot(w_feat, w1).astype(jnp.bfloat16)            # (N, 50) bf16
    w3_row = w3.reshape(1, -1)                                    # (1, 10) for VPU layer 3
    return w_fused, b1, w2, b2, w3_row, b3


# -----------------------------------------------------------------------------
# Pure-JAX reference (same numerics: bf16-rounded x / fused weight, f32 math)
# -----------------------------------------------------------------------------
def ann_forward_reference(x, params, indices):
    w1, b1, w2, b2, w3, b3 = params
    wf = jnp.dot(make_feature_weights(indices), w1).astype(jnp.bfloat16).astype(jnp.float32)
    xb = x.astype(jnp.bfloat16).astype(jnp.float32)
    h = xb @ wf + b1
    h = jnp.where(h >= 0, h, LEAKY_SLOPE * h)
    h = h @ w2 + b2
    h = jnp.where(h >= 0, h, LEAKY_SLOPE * h)
    y = h @ w3 + b3
    return y.reshape(-1)


# -----------------------------------------------------------------------------
if __name__ == "__main__":
    key = jax.random.PRNGKey(0)
    k_x, k_p = jax.random.split(key)

    B = 2
    x = jax.random.uniform(k_x, (B, N_SAMPLES), jnp.float32)      # (batch, 4200)
    indices = jnp.linspace(0.0, 1.0, N_SAMPLES, dtype=jnp.float32)

    raw_params = init_params(k_p)
    fused_params = fuse_params(raw_params, indices)

    out = ann_forward_pallas(x, fused_params)
    out = jax.block_until_ready(out)

    assert out.shape == (B,) and out.dtype == jnp.float32
    ref = ann_forward_reference(x, raw_params, indices)
    assert bool(jnp.all(jnp.isfinite(out)))
    assert jnp.allclose(out, ref, rtol=5e-2, atol=5e-2), (out, ref)
    print("KERNEL_OK")
</pallas_src>

<mosaic_0001>
module attributes {stable_mosaic.version = 11 : i64} {
  func.func @ann_fused_kernel(%arg0: i32, %arg1: memref<8x4200xf32, #tpu.memory_space<vmem>>, %arg2: memref<4200x50xbf16, #tpu.memory_space<vmem>>, %arg3: memref<1x50xf32, #tpu.memory_space<vmem>>, %arg4: memref<50x10xf32, #tpu.memory_space<vmem>>, %arg5: memref<1x10xf32, #tpu.memory_space<vmem>>, %arg6: memref<1x10xf32, #tpu.memory_space<vmem>>, %arg7: memref<1x1xf32, #tpu.memory_space<vmem>>, %arg8: memref<8x1xf32, #tpu.memory_space<vmem>>) attributes {dimension_semantics = [#tpu.dimension_semantics<parallel>], iteration_bounds = array<i64: 1>, scalar_prefetch = 0 : i64, scratch_operands = 0 : i64, tpu.core_type = #tpu.core_type<tc>, window_params = [{transform_indices = @transform_0, window_bounds = array<i64: 8, 4200>}, {pipeline_mode = #tpu.pipeline_mode<synchronous>, transform_indices = @transform_1, window_bounds = array<i64: 4200, 50>}, {pipeline_mode = #tpu.pipeline_mode<synchronous>, transform_indices = @transform_2, window_bounds = array<i64: 1, 50>}, {pipeline_mode = #tpu.pipeline_mode<synchronous>, transform_indices = @transform_3, window_bounds = array<i64: 50, 10>}, {pipeline_mode = #tpu.pipeline_mode<synchronous>, transform_indices = @transform_4, window_bounds = array<i64: 1, 10>}, {pipeline_mode = #tpu.pipeline_mode<synchronous>, transform_indices = @transform_5, window_bounds = array<i64: 1, 10>}, {pipeline_mode = #tpu.pipeline_mode<synchronous>, transform_indices = @transform_6, window_bounds = array<i64: 1, 1>}, {transform_indices = @transform_7, window_bounds = array<i64: 8, 1>}]} {
    %c0 = arith.constant 0 : index
    %c0_0 = arith.constant 0 : index
    %0 = vector.load %arg1[%c0, %c0_0] : memref<8x4200xf32, #tpu.memory_space<vmem>>, vector<8x4200xf32>
    %1 = arith.truncf %0 : vector<8x4200xf32> to vector<8x4200xbf16>
    %c0_1 = arith.constant 0 : index
    %c0_2 = arith.constant 0 : index
    %2 = vector.load %arg2[%c0_1, %c0_2] : memref<4200x50xbf16, #tpu.memory_space<vmem>>, vector<4200x50xbf16>
    %cst = arith.constant dense<0.000000e+00> : vector<8x50xf32>
    %3 = tpu.matmul %1, %2, %cst {dimension_numbers = #tpu.dot_dimension_numbers<[1], [0], [0], [1], [0, 0, 1, 1], [], []>} : vector<8x4200xbf16>, vector<4200x50xbf16>, vector<8x50xf32> -> vector<8x50xf32>
    %c0_3 = arith.constant 0 : index
    %c0_4 = arith.constant 0 : index
    %4 = vector.load %arg3[%c0_3, %c0_4] : memref<1x50xf32, #tpu.memory_space<vmem>>, vector<1x50xf32>
    %5 = vector.broadcast %4 : vector<1x50xf32> to vector<8x50xf32>
    %6 = arith.addf %3, %5 : vector<8x50xf32>
    %cst_5 = arith.constant 0.000000e+00 : f32
    %7 = vector.broadcast %cst_5 : f32 to vector<8x50xf32>
    %8 = arith.cmpf oge, %6, %7 : vector<8x50xf32>
    %cst_6 = arith.constant 0.00999999977 : f32
    %9 = vector.broadcast %cst_6 : f32 to vector<8x50xf32>
    %10 = arith.mulf %9, %6 : vector<8x50xf32>
    %11 = arith.select %8, %6, %10 : vector<8x50xi1>, vector<8x50xf32>
    %c0_7 = arith.constant 0 : index
    %c0_8 = arith.constant 0 : index
    %12 = vector.load %arg4[%c0_7, %c0_8] : memref<50x10xf32, #tpu.memory_space<vmem>>, vector<50x10xf32>
    %cst_9 = arith.constant dense<0.000000e+00> : vector<8x10xf32>
    %13 = tpu.matmul %11, %12, %cst_9 {dimension_numbers = #tpu.dot_dimension_numbers<[1], [0], [0], [1], [0, 0, 1, 1], [], []>} : vector<8x50xf32>, vector<50x10xf32>, vector<8x10xf32> -> vector<8x10xf32>
    %c0_10 = arith.constant 0 : index
    %c0_11 = arith.constant 0 : index
    %14 = vector.load %arg5[%c0_10, %c0_11] : memref<1x10xf32, #tpu.memory_space<vmem>>, vector<1x10xf32>
    %15 = vector.broadcast %14 : vector<1x10xf32> to vector<8x10xf32>
    %16 = arith.addf %13, %15 : vector<8x10xf32>
    %cst_12 = arith.constant 0.000000e+00 : f32
    %17 = vector.broadcast %cst_12 : f32 to vector<8x10xf32>
    %18 = arith.cmpf oge, %16, %17 : vector<8x10xf32>
    %cst_13 = arith.constant 0.00999999977 : f32
    %19 = vector.broadcast %cst_13 : f32 to vector<8x10xf32>
    %20 = arith.mulf %19, %16 : vector<8x10xf32>
    %21 = arith.select %18, %16, %20 : vector<8x10xi1>, vector<8x10xf32>
    %c0_14 = arith.constant 0 : index
    %c0_15 = arith.constant 0 : index
    %22 = vector.load %arg6[%c0_14, %c0_15] : memref<1x10xf32, #tpu.memory_space<vmem>>, vector<1x10xf32>
    %23 = vector.broadcast %22 : vector<1x10xf32> to vector<8x10xf32>
    %24 = arith.mulf %21, %23 : vector<8x10xf32>
    %cst_16 = arith.constant dense<0.000000e+00> : vector<8xf32>
    %25 = vector.multi_reduction <add>, %24, %cst_16 [1] : vector<8x10xf32> to vector<8xf32>
    %26 = vector.shape_cast %25 : vector<8xf32> to vector<8x1xf32>
    %c0_17 = arith.constant 0 : index
    %c0_18 = arith.constant 0 : index
    %27 = vector.load %arg7[%c0_17, %c0_18] : memref<1x1xf32, #tpu.memory_space<vmem>>, vector<1x1xf32>
    %28 = vector.broadcast %27 : vector<1x1xf32> to vector<8x1xf32>
    %29 = arith.addf %26, %28 : vector<8x1xf32>
    %c0_19 = arith.constant 0 : index
    %c0_20 = arith.constant 0 : index
    %30 = vector.load %arg8[%c0_19, %c0_20] : memref<8x1xf32, #tpu.memory_space<vmem>>, vector<8x1xf32>
    tpu.vector_store %arg8[%c0_19, %c0_20], %29 {strides = array<i32>} : memref<8x1xf32, #tpu.memory_space<vmem>>, vector<8x1xf32>,
    return
  }
  func.func @transform_0(%arg0: i32) -> (i32, i32) {
    %c0_i32 = arith.constant 0 : i32
    %c0_i32_0 = arith.constant 0 : i32
    return %arg0, %c0_i32 : i32, i32
  }
  func.func @transform_1(%arg0: i32) -> (i32, i32) {
    %c0_i32 = arith.constant 0 : i32
    %c0_i32_0 = arith.constant 0 : i32
    %c0_i32_1 = arith.constant 0 : i32
    return %c0_i32, %c0_i32_0 : i32, i32
  }
  func.func @transform_2(%arg0: i32) -> (i32, i32) {
    %c0_i32 = arith.constant 0 : i32
    %c0_i32_0 = arith.constant 0 : i32
    %c0_i32_1 = arith.constant 0 : i32
    return %c0_i32, %c0_i32_0 : i32, i32
  }
  func.func @transform_3(%arg0: i32) -> (i32, i32) {
    %c0_i32 = arith.constant 0 : i32
    %c0_i32_0 = arith.constant 0 : i32
    %c0_i32_1 = arith.constant 0 : i32
    return %c0_i32, %c0_i32_0 : i32, i32
  }
  func.func @transform_4(%arg0: i32) -> (i32, i32) {
    %c0_i32 = arith.constant 0 : i32
    %c0_i32_0 = arith.constant 0 : i32
    %c0_i32_1 = arith.constant 0 : i32
    return %c0_i32, %c0_i32_0 : i32, i32
  }
  func.func @transform_5(%arg0: i32) -> (i32, i32) {
    %c0_i32 = arith.constant 0 : i32
    %c0_i32_0 = arith.constant 0 : i32
    %c0_i32_1 = arith.constant 0 : i32
    return %c0_i32, %c0_i32_0 : i32, i32
  }
  func.func @transform_6(%arg0: i32) -> (i32, i32) {
    %c0_i32 = arith.constant 0 : i32
    %c0_i32_0 = arith.constant 0 : i32
    %c0_i32_1 = arith.constant 0 : i32
    return %c0_i32, %c0_i32_0 : i32, i32
  }
  func.func @transform_7(%arg0: i32) -> (i32, i32) {
    %c0_i32 = arith.constant 0 : i32
    %c0_i32_0 = arith.constant 0 : i32
    return %arg0, %c0_i32 : i32, i32
  }
}

</mosaic_0001>

<bundles_post_ra>
// kernel: tpu_custom_call.1
= control target key start
LH: loop header
LB: loop body
LE: loop exit
PB: predicated region body
PF: predicated region fallthrough
CT: control target
= control target key end

     0   :  { %vm2206_vm0 = vcmask 1043456   ;;  %vm3953_vm1 = vmmov 0   ;;  %vm2202_vm2 = vcmask 850944   ;;  %vm2911_vm3 = vcmask 1041408   ;;  %s4937_s1 = inlined_call_operand.vmem [shape: bf16[4200,50], index: 1, kind: input, shape index: {}]   ;;  %s4938_s0 = inlined_call_operand.vmem [shape: f32[8,4200], index: 0, kind: input, shape index: {}]   ;;  %s4939_s2 = inlined_call_operand.vmem [shape: f32[1,50], index: 2, kind: input, shape index: {}]   ;;  %s4940_s3 = inlined_call_operand.vmem [shape: f32[50,10], index: 3, kind: input, shape index: {}]   ;;  %s4941_s6 = inlined_call_operand.<no memory space> [shape: f32[1,1], index: 6, kind: input, shape index: {}]   ;;  %s4942_s4 = inlined_call_operand.vmem [shape: f32[1,10], index: 4, kind: input, shape index: {}]   ;;  %s4943_s5 = inlined_call_operand.vmem [shape: f32[1,10], index: 5, kind: input, shape index: {}]   ;;  %s4944_s7 = inlined_call_operand.vmem [shape: f32[8,1], index: 7, kind: output, shape index: {}]  }
   0x1   :  { %v3689_v0 = vld [vmem:[%s4937_s1 + $0x78] sm:$0xff]   ;;  %v3693_v4 = vld [vmem:[%s4937_s1 + $0x70] sm:$0xff]   ;;  %v3697_v8 = vld [vmem:[%s4937_s1 + $0x68] sm:$0xff]   ;;  %vm2907_vm5 = vcmask 408576   ;;  %vm2996_vm7 = vcmask 80896   ;;  %vm3008_vm8 = vcmask 7168  }
   0x2   :  { %v3690_v1 = vld [vmem:[%s4937_s1 + $0x38] sm:$0xff]   ;;  %3284 = vmatprep.subr.bf16.mxu0 %v3689_v0  ;;  %v3694_v5 = vld [vmem:[%s4937_s1 + $0x30] sm:$0xff]   ;;  %v3698_v9 = vld [vmem:[%s4937_s1 + $0x28] sm:$0xff]  }
   0x3   :  { %v3691_v2 = vld [vmem:[%s4937_s1 + $0xf8] sm:$0xff]   ;;  %3285 = vmatpush3.bf16.msra.mxu0 %v3690_v1  ;;  %v3695_v6 = vld [vmem:[%s4937_s1 + $0xf0] sm:$0xff]   ;;  %v3699_v10 = vld [vmem:[%s4937_s1 + $0xe8] sm:$0xff]  }
   0x4   :  { %v3692_v3 = vld [vmem:[%s4937_s1 + $0xb8] sm:$0xff]   ;;  %3306 = vmatprep.subr.bf16.mxu1 %v3691_v2  ;;  %3286 = vmatprep.subr.bf16.mxu0 %v3693_v4  ;;  %v3696_v7 = vld [vmem:[%s4937_s1 + $0xb0] sm:$0xff]   ;;  %v3700_v11 = vld [vmem:[%s4937_s1 + $0xa8] sm:$0xff]  }
   0x5   :  { %3307 = vmatpush3.bf16.msra.mxu1 %v3692_v3  ;;  %v3701_v12 = vld [vmem:[%s4937_s1 + $0x60] sm:$0xff]   ;;  %v3705_v16 = vld [vmem:[%s4937_s1 + $0x58] sm:$0xff]   ;;  %v3709_v20 = vld [vmem:[%s4937_s1 + $0x50] sm:$0xff]  }
   0x6   :  { %3308 = vmatprep.subr.bf16.mxu1 %v3695_v6  ;;  %v3702_v13 = vld [vmem:[%s4937_s1 + $0x20] sm:$0xff]   ;;  %v3706_v17 = vld [vmem:[%s4937_s1 + $0x18] sm:$0xff]   ;;  %v3710_v21 = vld [vmem:[%s4937_s1 + $0x10] sm:$0xff]  }
   0x7   :  { %3287 = vmatpush3.bf16.msra.mxu0 %v3694_v5  ;;  %v3703_v14 = vld [vmem:[%s4937_s1 + $0xe0] sm:$0xff]   ;;  %v3707_v18 = vld [vmem:[%s4937_s1 + $0xd8] sm:$0xff]   ;;  %v3711_v22 = vld [vmem:[%s4937_s1 + $0xd0] sm:$0xff]  }
   0x8   :  { %3288 = vmatprep.subr.bf16.mxu0 %v3697_v8  ;;  %v3704_v15 = vld [vmem:[%s4937_s1 + $0xa0] sm:$0xff]   ;;  %v3708_v19 = vld [vmem:[%s4937_s1 + $0x98] sm:$0xff]   ;;  %v3712_v23 = vld [vmem:[%s4937_s1 + $0x90] sm:$0xff]  }
   0x9   :  { %3309 = vmatpush3.bf16.msra.mxu1 %v3696_v7  ;;  %v3713_v24 = vld [vmem:[%s4937_s1 + $0x48] sm:$0xff]   ;;  %v3717_v28 = vld [vmem:[%s4937_s1 + $0x40] sm:$0xff]   ;;  %v3721_v36 = vld [vmem:[%s4937_s1 + $0x178] sm:$0xff]  }
   0xa   :  { %3310 = vmatprep.subr.bf16.mxu1 %v3699_v10  ;;  %v3714_v25 = vld [vmem:[%s4937_s1 + $0x8] sm:$0xff]   ;;  %v3718_v29 = vld [vmem:[%s4937_s1] sm:$0xff]   ;;  %v32_v37 = vld [vmem:[%s4938_s0 + $0x18] sm:$0xff] }
   0xb   :  { %3289 = vmatpush3.bf16.msra.mxu0 %v3698_v9  ;;  %v3715_v26 = vld [vmem:[%s4937_s1 + $0xc8] sm:$0xff]   ;;  %v3719_v30 = vld [vmem:[%s4937_s1 + $0xc0] sm:$0xff]   ;;  %v65_v38 = vpack.c.bf16 %v32_v37, %v32_v37  ;;  %v3722_v39 = vld [vmem:[%s4937_s1 + $0x138] sm:$0xff]  }
   0xc   :  { %3290 = vmatprep.subr.bf16.mxu0 %v3701_v12  ;;  %v3716_v27 = vld [vmem:[%s4937_s1 + $0x88] sm:$0xff]   ;;  %v3720_v33 = vld [vmem:[%s4937_s1 + $0x80] sm:$0xff]   ;;  %v31_v40 = vld [vmem:[%s4938_s0 + $0x10] sm:$0xff] }
   0xd   :  { %3311 = vmatpush3.bf16.msra.mxu1 %v3700_v11  ;;  %v30_v31 = vld [vmem:[%s4938_s0 + $0x8] sm:$0xff]  ;;  %v29_v34 = vld [vmem:[%s4938_s0] sm:$0xff]  ;;  %2282 = vmatprep.mubr.bf16.mxu1 %v65_v38  ;;  %v64_v41 = vpack.c.bf16 %v31_v40, %v31_v40  ;;  %v3723_v42 = vld [vmem:[%s4937_s1 + $0x1f8] sm:$0xff]  }
   0xe   :  { %3312 = vmatprep.subr.bf16.mxu1 %v3703_v14  ;;  %v63_v32 = vpack.c.bf16 %v30_v31, %v30_v31  ;;  %v62_v35 = vpack.c.bf16 %v29_v34, %v29_v34  ;;  %v3724_v43 = vld [vmem:[%s4937_s1 + $0x1b8] sm:$0xff]   ;;  %v3725_v44 = vld [vmem:[%s4937_s1 + $0x170] sm:$0xff]   ;;  %v3729_v48 = vld [vmem:[%s4937_s1 + $0x168] sm:$0xff]  }
   0xf   :  { %3291 = vmatpush3.bf16.msra.mxu0 %v3702_v13  ;;  %v3726_v45 = vld [vmem:[%s4937_s1 + $0x130] sm:$0xff]   ;;  %v3730_v49 = vld [vmem:[%s4937_s1 + $0x128] sm:$0xff]   ;;  %v3733_v52 = vld [vmem:[%s4937_s1 + $0x160] sm:$0xff]  }
  0x10   :  { %3292 = vmatprep.subr.bf16.mxu0 %v3705_v16  ;;  %2242 = vmatprep.mubr.bf16.mxu0 %v63_v32  ;;  %v3727_v46 = vld [vmem:[%s4937_s1 + $0x1f0] sm:$0xff]   ;;  %v3731_v50 = vld [vmem:[%s4937_s1 + $0x1e8] sm:$0xff]   ;;  %v3734_v53 = vld [vmem:[%s4937_s1 + $0x120] sm:$0xff]  }
  0x11   :  { %3313 = vmatpush3.bf16.msra.mxu1 %v3704_v15  ;;  %v3728_v47 = vld [vmem:[%s4937_s1 + $0x1b0] sm:$0xff]   ;;  %v3732_v51 = vld [vmem:[%s4937_s1 + $0x1a8] sm:$0xff]   ;;  %v3735_v54 = vld [vmem:[%s4937_s1 + $0x1e0] sm:$0xff]  }
  0x12   :  { %3314 = vmatprep.subr.bf16.mxu1 %v3707_v18  ;;  %v3736_v55 = vld [vmem:[%s4937_s1 + $0x1a0] sm:$0xff]   ;;  %v3737_v56 = vld [vmem:[%s4937_s1 + $0x158] sm:$0xff]   ;;  %v3741_v60 = vld [vmem:[%s4937_s1 + $0x150] sm:$0xff]  }
  0x13   :  { %3293 = vmatpush3.bf16.msra.mxu0 %v3706_v17  ;;  %v3738_v57 = vld [vmem:[%s4937_s1 + $0x118] sm:$0xff]   ;;  %v3742_v61 = vld [vmem:[%s4937_s1 + $0x110] sm:$0xff]   ;;  %v3745_v0 = vld [vmem:[%s4937_s1 + $0x148] sm:$0xff]  }
  0x14   :  { %3294 = vmatprep.subr.bf16.mxu0 %v3709_v20  ;;  %v3739_v58 = vld [vmem:[%s4937_s1 + $0x1d8] sm:$0xff]   ;;  %v3743_v62 = vld [vmem:[%s4937_s1 + $0x1d0] sm:$0xff]   ;;  %v3746_v1 = vld [vmem:[%s4937_s1 + $0x108] sm:$0xff]  }
  0x15   :  { %3315 = vmatpush3.bf16.msra.mxu1 %v3708_v19  ;;  %v3740_v59 = vld [vmem:[%s4937_s1 + $0x198] sm:$0xff]   ;;  %v3744_v63 = vld [vmem:[%s4937_s1 + $0x190] sm:$0xff]   ;;  %v3747_v2 = vld [vmem:[%s4937_s1 + $0x1c8] sm:$0xff]  }
  0x16   :  { %3316 = vmatprep.subr.bf16.mxu1 %v3711_v22  ;;  %v3748_v3 = vld [vmem:[%s4937_s1 + $0x188] sm:$0xff]   ;;  %v3749_v4 = vld [vmem:[%s4937_s1 + $0x140] sm:$0xff]   ;;  %v3753_v12 = vld [vmem:[%s4937_s1 + $0x278] sm:$0xff]  }
  0x17   :  { %3295 = vmatpush3.bf16.msra.mxu0 %v3710_v21  ;;  %v3750_v5 = vld [vmem:[%s4937_s1 + $0x100] sm:$0xff]   ;;  %v34_v7 = vld [vmem:[%s4938_s0 + $0x28] sm:$0xff]  ;;  %v36_v13 = vld [vmem:[%s4938_s0 + $0x38] sm:$0xff] }
  0x18   :  { %3296 = vmatprep.subr.bf16.mxu0 %v3713_v24  ;;  %v3751_v6 = vld [vmem:[%s4937_s1 + $0x1c0] sm:$0xff]   ;;  %v67_v8 = vpack.c.bf16 %v34_v7, %v34_v7  ;;  %v69_v14 = vpack.c.bf16 %v36_v13, %v36_v13  ;;  %v3754_v15 = vld [vmem:[%s4937_s1 + $0x238] sm:$0xff]   ;;  %v35_v16 = vld [vmem:[%s4938_s0 + $0x30] sm:$0xff] }
  0x19   :  { %3317 = vmatpush3.bf16.msra.mxu1 %v3712_v23  ;;  %v3752_v9 = vld [vmem:[%s4937_s1 + $0x180] sm:$0xff]   ;;  %v68_v17 = vpack.c.bf16 %v35_v16, %v35_v16  ;;  %v3755_v18 = vld [vmem:[%s4937_s1 + $0x2f8] sm:$0xff]   ;;  %v3757_v20 = vld [vmem:[%s4937_s1 + $0x270] sm:$0xff]  }
  0x1a   :  { %3318 = vmatprep.subr.bf16.mxu1 %v3715_v26  ;;  %v33_v10 = vld [vmem:[%s4938_s0 + $0x20] sm:$0xff]  ;;  %v3756_v19 = vld [vmem:[%s4937_s1 + $0x2b8] sm:$0xff]   ;;  %v3758_v21 = vld [vmem:[%s4937_s1 + $0x230] sm:$0xff]  }
  0x1b   :  { %3297 = vmatpush3.bf16.msra.mxu0 %v3714_v25  ;;  %v66_v11 = vpack.c.bf16 %v33_v10, %v33_v10  ;;  %v3759_v22 = vld [vmem:[%s4937_s1 + $0x2f0] sm:$0xff]   ;;  %v3761_v24 = vld [vmem:[%s4937_s1 + $0x268] sm:$0xff]   ;;  %v3768_v31 = vld [vmem:[%s4937_s1 + $0x2a0] sm:$0xff]  }
  0x1c   :  { %3298 = vmatprep.subr.bf16.mxu0 %v3717_v28  ;;  %v3760_v23 = vld [vmem:[%s4937_s1 + $0x2b0] sm:$0xff]   ;;  %v3762_v25 = vld [vmem:[%s4937_s1 + $0x228] sm:$0xff]   ;;  %v3765_v28 = vld [vmem:[%s4937_s1 + $0x260] sm:$0xff]  }
  0x1d   :  { %3319 = vmatpush3.bf16.msra.mxu1 %v3716_v27  ;;  %v3763_v26 = vld [vmem:[%s4937_s1 + $0x2e8] sm:$0xff]   ;;  %v3769_v32 = vld [vmem:[%s4937_s1 + $0x258] sm:$0xff]   ;;  %v3774_v37 = vld [vmem:[%s4937_s1 + $0x210] sm:$0xff]  }
  0x1e   :  { %3320 = vmatprep.subr.bf16.mxu1 %v3719_v30  ;;  %v3764_v27 = vld [vmem:[%s4937_s1 + $0x2a8] sm:$0xff]   ;;  %v3767_v30 = vld [vmem:[%s4937_s1 + $0x2e0] sm:$0xff]   ;;  %v3771_v34 = vld [vmem:[%s4937_s1 + $0x2d8] sm:$0xff]  }
  0x1f   :  { %3299 = vmatpush3.bf16.msra.mxu0 %v3718_v29  ;;  %v3766_v29 = vld [vmem:[%s4937_s1 + $0x220] sm:$0xff]   ;;  %v3775_v38 = vld [vmem:[%s4937_s1 + $0x2d0] sm:$0xff]   ;;  %v3777_v40 = vld [vmem:[%s4937_s1 + $0x248] sm:$0xff]  }
  0x20   :  { %3328 = vmatprep.subr.bf16.mxu0 %v3721_v36  ;;  %v3773_v36 = vld [vmem:[%s4937_s1 + $0x250] sm:$0xff]   ;;  %v3800_v7 = vld [vmem:[%s4937_s1 + $0x3a0] sm:$0xff]   ;;  %v3803_v10 = vld [vmem:[%s4937_s1 + $0x3d8] sm:$0xff]  }
  0x21   :  { %3321 = vmatpush3.bf16.msra.mxu1 %v3720_v33  ;;  %v3770_v33 = vld [vmem:[%s4937_s1 + $0x218] sm:$0xff]   ;;  %v3806_v13 = vld [vmem:[%s4937_s1 + $0x310] sm:$0xff]   ;;  %v3809_v16 = vld [vmem:[%s4937_s1 + $0x348] sm:$0xff]  }
  0x22   :  { %2243 = vmatmul.mubr.bf16.vlgmr.msra.gmra.mxu0 %v62_v35  ;;  %3350 = vmatprep.subr.bf16.mxu1 %v3723_v42  ;;  %v3772_v35 = vld [vmem:[%s4937_s1 + $0x298] sm:$0xff]   ;;  %v3779_v42 = vld [vmem:[%s4937_s1 + $0x2c8] sm:$0xff]  }
  0x23   :  { %3329 = vmatpush3.bf16.msra.mxu0 %v3722_v39  ;;  %2322 = vmatprep.mubr.bf16.mxu0 %v67_v8  ;;  %v3776_v39 = vld [vmem:[%s4937_s1 + $0x290] sm:$0xff]   ;;  %v3801_v8 = vld [vmem:[%s4937_s1 + $0x358] sm:$0xff]  }
  0x24   :  { %2283 = vmatmul.mubr.bf16.vlgmr.msra.gmra.mxu1 %v64_v41  ;;  %3330 = vmatprep.subr.bf16.mxu0 %v3725_v44  ;;  %v3778_v41 = vld [vmem:[%s4937_s1 + $0x208] sm:$0xff]   ;;  %v3781_v44 = vld [vmem:[%s4937_s1 + $0x240] sm:$0xff]  }
  0x25   :  { %3351 = vmatpush3.bf16.msra.mxu1 %v3724_v43  ;;  %2362 = vmatprep.mubr.bf16.mxu1 %v69_v14  ;;  %v3780_v43 = vld [vmem:[%s4937_s1 + $0x288] sm:$0xff]   ;;  %v3807_v14 = vld [vmem:[%s4937_s1 + $0x3d0] sm:$0xff]  }
  0x26   :  { %3352 = vmatprep.subr.bf16.mxu1 %v3727_v46  ;;  %v3783_v46 = vld [vmem:[%s4937_s1 + $0x2c0] sm:$0xff]  }
  0x27   :  { %3331 = vmatpush3.bf16.msra.mxu0 %v3726_v45  ;;  %v3782_v45 = vld [vmem:[%s4937_s1 + $0x200] sm:$0xff]  }
  0x28   :  { %3332 = vmatprep.subr.bf16.mxu0 %v3729_v48 }
  0x29   :  { %3353 = vmatpush3.bf16.msra.mxu1 %v3728_v47  ;;  %v38_v47 = vld [vmem:[%s4938_s0 + $0x48] sm:$0xff] }
  0x2a   :  { %3354 = vmatprep.subr.bf16.mxu1 %v3731_v50  ;;  %v71_v48 = vpack.c.bf16 %v38_v47, %v38_v47  ;;  %v37_v50 = vld [vmem:[%s4938_s0 + $0x40] sm:$0xff] }
  0x2b   :  { %3333 = vmatpush3.bf16.msra.mxu0 %v3730_v49  ;;  %v3784_v49 = vld [vmem:[%s4937_s1 + $0x280] sm:$0xff]  }
  0x2c   :  { %3334 = vmatprep.subr.bf16.mxu0 %v3733_v52  ;;  %v3785_v52 = vld [vmem:[%s4937_s1 + $0x378] sm:$0xff]   ;;  %v3832_v47 = vld [vmem:[%s4937_s1 + $0x4a0] sm:$0xff]  }
  0x2d   :  { %3355 = vmatpush3.bf16.msra.mxu1 %v3732_v51  ;;  %v70_v51 = vpack.c.bf16 %v37_v50, %v37_v50  ;;  %v3835_v50 = vld [vmem:[%s4937_s1 + $0x4d8] sm:$0xff]  }
  0x2e   :  { %3356 = vmatprep.subr.bf16.mxu1 %v3735_v54 }
  0x2f   :  { %3335 = vmatpush3.bf16.msra.mxu0 %v3734_v53  ;;  %v40_v53 = vld [vmem:[%s4938_s0 + $0x58] sm:$0xff] }
  0x30   :  { %3336 = vmatprep.subr.bf16.mxu0 %v3737_v56  ;;  %v73_v54 = vpack.c.bf16 %v40_v53, %v40_v53  ;;  %v39_v56 = vld [vmem:[%s4938_s0 + $0x50] sm:$0xff] }
  0x31   :  { %3357 = vmatpush3.bf16.msra.mxu1 %v3736_v55  ;;  %v3786_v55 = vld [vmem:[%s4937_s1 + $0x338] sm:$0xff]   ;;  %v3838_v53 = vld [vmem:[%s4937_s1 + $0x410] sm:$0xff]  }
  0x32   :  { %3358 = vmatprep.subr.bf16.mxu1 %v3739_v58  ;;  %v3787_v58 = vld [vmem:[%s4937_s1 + $0x3f8] sm:$0xff]  }
  0x33   :  { %3337 = vmatpush3.bf16.msra.mxu0 %v3738_v57  ;;  %v72_v57 = vpack.c.bf16 %v39_v56, %v39_v56  ;;  %v3841_v56 = vld [vmem:[%s4937_s1 + $0x448] sm:$0xff]  }
  0x34   :  { %3338 = vmatprep.subr.bf16.mxu0 %v3741_v60  ;;  %v3789_v60 = vld [vmem:[%s4937_s1 + $0x370] sm:$0xff]  }
  0x35   :  { %3359 = vmatpush3.bf16.msra.mxu1 %v3740_v59  ;;  %v3788_v59 = vld [vmem:[%s4937_s1 + $0x3b8] sm:$0xff]  }
  0x36   :  { %3360 = vmatprep.subr.bf16.mxu1 %v3743_v62  ;;  %v3791_v62 = vld [vmem:[%s4937_s1 + $0x3f0] sm:$0xff]  }
  0x37   :  { %3339 = vmatpush3.bf16.msra.mxu0 %v3742_v61  ;;  %v3790_v61 = vld [vmem:[%s4937_s1 + $0x330] sm:$0xff]  }
  0x38   :  { %3340 = vmatprep.subr.bf16.mxu0 %v3745_v0  ;;  %v3793_v0 = vld [vmem:[%s4937_s1 + $0x368] sm:$0xff]  }
  0x39   :  { %3361 = vmatpush3.bf16.msra.mxu1 %v3744_v63  ;;  %v3792_v63 = vld [vmem:[%s4937_s1 + $0x3b0] sm:$0xff]  }
  0x3a   :  { %3362 = vmatprep.subr.bf16.mxu1 %v3747_v2  ;;  %v3795_v2 = vld [vmem:[%s4937_s1 + $0x3e8] sm:$0xff]  }
  0x3b   :  { %3341 = vmatpush3.bf16.msra.mxu0 %v3746_v1  ;;  %v3794_v1 = vld [vmem:[%s4937_s1 + $0x328] sm:$0xff]  }
  0x3c   :  { %3342 = vmatprep.subr.bf16.mxu0 %v3749_v4  ;;  %v3797_v4 = vld [vmem:[%s4937_s1 + $0x360] sm:$0xff]  }
  0x3d   :  { %3363 = vmatpush3.bf16.msra.mxu1 %v3748_v3  ;;  %v3796_v3 = vld [vmem:[%s4937_s1 + $0x3a8] sm:$0xff]  }
  0x3e   :  { %3364 = vmatprep.subr.bf16.mxu1 %v3751_v6  ;;  %v3799_v6 = vld [vmem:[%s4937_s1 + $0x3e0] sm:$0xff]  }
  0x3f   :  { %3343 = vmatpush3.bf16.msra.mxu0 %v3750_v5  ;;  %v3798_v5 = vld [vmem:[%s4937_s1 + $0x320] sm:$0xff]  }
  0x40   :  { %3372 = vmatprep.subr.bf16.mxu0 %v3753_v12  ;;  %v3805_v12 = vld [vmem:[%s4937_s1 + $0x350] sm:$0xff]  }
  0x41   :  { %3365 = vmatpush3.bf16.msra.mxu1 %v3752_v9  ;;  %v3802_v9 = vld [vmem:[%s4937_s1 + $0x318] sm:$0xff]  }
  0x42   :  { %2323 = vmatmul.mubr.bf16.vlgmr.msra.gmra.mxu0 %v66_v11  ;;  %3394 = vmatprep.subr.bf16.mxu1 %v3755_v18  ;;  %v3804_v11 = vld [vmem:[%s4937_s1 + $0x398] sm:$0xff]   ;;  %v3811_v18 = vld [vmem:[%s4937_s1 + $0x3c8] sm:$0xff]  }
  0x43   :  { %3373 = vmatpush3.bf16.msra.mxu0 %v3754_v15  ;;  %2402 = vmatprep.mubr.bf16.mxu0 %v71_v48  ;;  %v3808_v15 = vld [vmem:[%s4937_s1 + $0x390] sm:$0xff]   ;;  %v3833_v48 = vld [vmem:[%s4937_s1 + $0x458] sm:$0xff]  }
  0x44   :  { %2363 = vmatmul.mubr.bf16.vlgmr.msra.gmra.mxu1 %v68_v17  ;;  %3374 = vmatprep.subr.bf16.mxu0 %v3757_v20  ;;  %v3810_v17 = vld [vmem:[%s4937_s1 + $0x308] sm:$0xff]   ;;  %v3813_v20 = vld [vmem:[%s4937_s1 + $0x340] sm:$0xff]  }
  0x45   :  { %3395 = vmatpush3.bf16.msra.mxu1 %v3756_v19  ;;  %2442 = vmatprep.mubr.bf16.mxu1 %v73_v54  ;;  %v3812_v19 = vld [vmem:[%s4937_s1 + $0x388] sm:$0xff]   ;;  %v3839_v54 = vld [vmem:[%s4937_s1 + $0x4d0] sm:$0xff]  }
  0x46   :  { %3396 = vmatprep.subr.bf16.mxu1 %v3759_v22  ;;  %v3815_v22 = vld [vmem:[%s4937_s1 + $0x3c0] sm:$0xff]  }
  0x47   :  { %3375 = vmatpush3.bf16.msra.mxu0 %v3758_v21  ;;  %v3814_v21 = vld [vmem:[%s4937_s1 + $0x300] sm:$0xff]  }
  0x48   :  { %3376 = vmatprep.subr.bf16.mxu0 %v3761_v24 }
  0x49   :  { %3397 = vmatpush3.bf16.msra.mxu1 %v3760_v23  ;;  %v42_v23 = vld [vmem:[%s4938_s0 + $0x68] sm:$0xff] }
  0x4a   :  { %3398 = vmatprep.subr.bf16.mxu1 %v3763_v26  ;;  %v75_v24 = vpack.c.bf16 %v42_v23, %v42_v23  ;;  %v41_v26 = vld [vmem:[%s4938_s0 + $0x60] sm:$0xff] }
  0x4b   :  { %3377 = vmatpush3.bf16.msra.mxu0 %v3762_v25  ;;  %v3816_v25 = vld [vmem:[%s4937_s1 + $0x380] sm:$0xff]  }
  0x4c   :  { %3378 = vmatprep.subr.bf16.mxu0 %v3765_v28  ;;  %v3817_v28 = vld [vmem:[%s4937_s1 + $0x478] sm:$0xff]   ;;  %v3864_v23 = vld [vmem:[%s4937_s1 + $0x5a0] sm:$0xff]  }
  0x4d   :  { %3399 = vmatpush3.bf16.msra.mxu1 %v3764_v27  ;;  %v74_v27 = vpack.c.bf16 %v41_v26, %v41_v26  ;;  %v3867_v26 = vld [vmem:[%s4937_s1 + $0x5d8] sm:$0xff]  }
  0x4e   :  { %3400 = vmatprep.subr.bf16.mxu1 %v3767_v30 }
  0x4f   :  { %3379 = vmatpush3.bf16.msra.mxu0 %v3766_v29  ;;  %v44_v29 = vld [vmem:[%s4938_s0 + $0x78] sm:$0xff] }
  0x50   :  { %3380 = vmatprep.subr.bf16.mxu0 %v3769_v32  ;;  %v77_v30 = vpack.c.bf16 %v44_v29, %v44_v29  ;;  %v43_v32 = vld [vmem:[%s4938_s0 + $0x70] sm:$0xff] }
  0x51   :  { %3401 = vmatpush3.bf16.msra.mxu1 %v3768_v31  ;;  %v3818_v31 = vld [vmem:[%s4937_s1 + $0x438] sm:$0xff]   ;;  %v3870_v29 = vld [vmem:[%s4937_s1 + $0x510] sm:$0xff]  }
  0x52   :  { %3402 = vmatprep.subr.bf16.mxu1 %v3771_v34  ;;  %v3819_v34 = vld [vmem:[%s4937_s1 + $0x4f8] sm:$0xff]  }
  0x53   :  { %3381 = vmatpush3.bf16.msra.mxu0 %v3770_v33  ;;  %v76_v33 = vpack.c.bf16 %v43_v32, %v43_v32  ;;  %v3873_v32 = vld [vmem:[%s4937_s1 + $0x548] sm:$0xff]  }
  0x54   :  { %3382 = vmatprep.subr.bf16.mxu0 %v3773_v36  ;;  %v3821_v36 = vld [vmem:[%s4937_s1 + $0x470] sm:$0xff]  }
  0x55   :  { %3403 = vmatpush3.bf16.msra.mxu1 %v3772_v35  ;;  %v3820_v35 = vld [vmem:[%s4937_s1 + $0x4b8] sm:$0xff]  }
  0x56   :  { %3404 = vmatprep.subr.bf16.mxu1 %v3775_v38  ;;  %v3823_v38 = vld [vmem:[%s4937_s1 + $0x4f0] sm:$0xff]  }
  0x57   :  { %3383 = vmatpush3.bf16.msra.mxu0 %v3774_v37  ;;  %v3822_v37 = vld [vmem:[%s4937_s1 + $0x430] sm:$0xff]  }
  0x58   :  { %3384 = vmatprep.subr.bf16.mxu0 %v3777_v40  ;;  %v3825_v40 = vld [vmem:[%s4937_s1 + $0x468] sm:$0xff]  }
  0x59   :  { %3405 = vmatpush3.bf16.msra.mxu1 %v3776_v39  ;;  %v3824_v39 = vld [vmem:[%s4937_s1 + $0x4b0] sm:$0xff]  }
  0x5a   :  { %3406 = vmatprep.subr.bf16.mxu1 %v3779_v42  ;;  %v3827_v42 = vld [vmem:[%s4937_s1 + $0x4e8] sm:$0xff]  }
  0x5b   :  { %3385 = vmatpush3.bf16.msra.mxu0 %v3778_v41  ;;  %v3826_v41 = vld [vmem:[%s4937_s1 + $0x428] sm:$0xff]  }
  0x5c   :  { %3386 = vmatprep.subr.bf16.mxu0 %v3781_v44  ;;  %v3829_v44 = vld [vmem:[%s4937_s1 + $0x460] sm:$0xff]  }
  0x5d   :  { %3407 = vmatpush3.bf16.msra.mxu1 %v3780_v43  ;;  %v3828_v43 = vld [vmem:[%s4937_s1 + $0x4a8] sm:$0xff]  }
  0x5e   :  { %3408 = vmatprep.subr.bf16.mxu1 %v3783_v46  ;;  %v3831_v46 = vld [vmem:[%s4937_s1 + $0x4e0] sm:$0xff]  }
  0x5f   :  { %3387 = vmatpush3.bf16.msra.mxu0 %v3782_v45  ;;  %v3830_v45 = vld [vmem:[%s4937_s1 + $0x420] sm:$0xff]  }
  0x60   :  { %3416 = vmatprep.subr.bf16.mxu0 %v3785_v52  ;;  %v3837_v52 = vld [vmem:[%s4937_s1 + $0x450] sm:$0xff]  }
  0x61   :  { %3409 = vmatpush3.bf16.msra.mxu1 %v3784_v49  ;;  %v3834_v49 = vld [vmem:[%s4937_s1 + $0x418] sm:$0xff]  }
  0x62   :  { %2403 = vmatmul.mubr.bf16.vlgmr.msra.gmra.mxu0 %v70_v51  ;;  %3438 = vmatprep.subr.bf16.mxu1 %v3787_v58  ;;  %v3836_v51 = vld [vmem:[%s4937_s1 + $0x498] sm:$0xff]   ;;  %v3843_v58 = vld [vmem:[%s4937_s1 + $0x4c8] sm:$0xff]  }
  0x63   :  { %3417 = vmatpush3.bf16.msra.mxu0 %v3786_v55  ;;  %2482 = vmatprep.mubr.bf16.mxu0 %v75_v24  ;;  %v3840_v55 = vld [vmem:[%s4937_s1 + $0x490] sm:$0xff]   ;;  %v3865_v24 = vld [vmem:[%s4937_s1 + $0x558] sm:$0xff]  }
  0x64   :  { %2443 = vmatmul.mubr.bf16.vlgmr.msra.gmra.mxu1 %v72_v57  ;;  %3418 = vmatprep.subr.bf16.mxu0 %v3789_v60  ;;  %v3842_v57 = vld [vmem:[%s4937_s1 + $0x408] sm:$0xff]   ;;  %v3845_v60 = vld [vmem:[%s4937_s1 + $0x440] sm:$0xff]  }
  0x65   :  { %3439 = vmatpush3.bf16.msra.mxu1 %v3788_v59  ;;  %2522 = vmatprep.mubr.bf16.mxu1 %v77_v30  ;;  %v3844_v59 = vld [vmem:[%s4937_s1 + $0x488] sm:$0xff]   ;;  %v3871_v30 = vld [vmem:[%s4937_s1 + $0x5d0] sm:$0xff]  }
  0x66   :  { %3440 = vmatprep.subr.bf16.mxu1 %v3791_v62  ;;  %v3847_v62 = vld [vmem:[%s4937_s1 + $0x4c0] sm:$0xff]  }
  0x67   :  { %3419 = vmatpush3.bf16.msra.mxu0 %v3790_v61  ;;  %v3846_v61 = vld [vmem:[%s4937_s1 + $0x400] sm:$0xff]  }
  0x68   :  { %3420 = vmatprep.subr.bf16.mxu0 %v3793_v0 }
  0x69   :  { %3441 = vmatpush3.bf16.msra.mxu1 %v3792_v63  ;;  %v46_v63 = vld [vmem:[%s4938_s0 + $0x88] sm:$0xff] }
  0x6a   :  { %3442 = vmatprep.subr.bf16.mxu1 %v3795_v2  ;;  %v79_v0 = vpack.c.bf16 %v46_v63, %v46_v63  ;;  %v45_v2 = vld [vmem:[%s4938_s0 + $0x80] sm:$0xff] }
  0x6b   :  { %3421 = vmatpush3.bf16.msra.mxu0 %v3794_v1  ;;  %v3848_v1 = vld [vmem:[%s4937_s1 + $0x480] sm:$0xff]  }
  0x6c   :  { %3422 = vmatprep.subr.bf16.mxu0 %v3797_v4  ;;  %v3849_v4 = vld [vmem:[%s4937_s1 + $0x578] sm:$0xff]   ;;  %v3896_v63 = vld [vmem:[%s4937_s1 + $0x6a0] sm:$0xff]  }
  0x6d   :  { %3443 = vmatpush3.bf16.msra.mxu1 %v3796_v3  ;;  %v78_v3 = vpack.c.bf16 %v45_v2, %v45_v2  ;;  %v3899_v2 = vld [vmem:[%s4937_s1 + $0x6d8] sm:$0xff]  }
  0x6e   :  { %3444 = vmatprep.subr.bf16.mxu1 %v3799_v6 }
  0x6f   :  { %3423 = vmatpush3.bf16.msra.mxu0 %v3798_v5  ;;  %v48_v5 = vld [vmem:[%s4938_s0 + $0x98] sm:$0xff] }
  0x70   :  { %3424 = vmatprep.subr.bf16.mxu0 %v3801_v8  ;;  %v81_v6 = vpack.c.bf16 %v48_v5, %v48_v5  ;;  %v47_v8 = vld [vmem:[%s4938_s0 + $0x90] sm:$0xff] }
  0x71   :  { %3445 = vmatpush3.bf16.msra.mxu1 %v3800_v7  ;;  %v3850_v7 = vld [vmem:[%s4937_s1 + $0x538] sm:$0xff]   ;;  %v3902_v5 = vld [vmem:[%s4937_s1 + $0x610] sm:$0xff]  }
  0x72   :  { %3446 = vmatprep.subr.bf16.mxu1 %v3803_v10  ;;  %v3851_v10 = vld [vmem:[%s4937_s1 + $0x5f8] sm:$0xff]  }
  0x73   :  { %3425 = vmatpush3.bf16.msra.mxu0 %v3802_v9  ;;  %v80_v9 = vpack.c.bf16 %v47_v8, %v47_v8  ;;  %v3905_v8 = vld [vmem:[%s4937_s1 + $0x648] sm:$0xff]  }
  0x74   :  { %3426 = vmatprep.subr.bf16.mxu0 %v3805_v12  ;;  %v3853_v12 = vld [vmem:[%s4937_s1 + $0x570] sm:$0xff]  }
  0x75   :  { %3447 = vmatpush3.bf16.msra.mxu1 %v3804_v11  ;;  %v3852_v11 = vld [vmem:[%s4937_s1 + $0x5b8] sm:$0xff]  }
  0x76   :  { %3448 = vmatprep.subr.bf16.mxu1 %v3807_v14  ;;  %v3855_v14 = vld [vmem:[%s4937_s1 + $0x5f0] sm:$0xff]  }
  0x77   :  { %3427 = vmatpush3.bf16.msra.mxu0 %v3806_v13  ;;  %v3854_v13 = vld [vmem:[%s4937_s1 + $0x530] sm:$0xff]  }
  0x78   :  { %3428 = vmatprep.subr.bf16.mxu0 %v3809_v16  ;;  %v3857_v16 = vld [vmem:[%s4937_s1 + $0x568] sm:$0xff]  }
  0x79   :  { %3449 = vmatpush3.bf16.msra.mxu1 %v3808_v15  ;;  %v3856_v15 = vld [vmem:[%s4937_s1 + $0x5b0] sm:$0xff]  }
  0x7a   :  { %3450 = vmatprep.subr.bf16.mxu1 %v3811_v18  ;;  %v3859_v18 = vld [vmem:[%s4937_s1 + $0x5e8] sm:$0xff]  }
  0x7b   :  { %3429 = vmatpush3.bf16.msra.mxu0 %v3810_v17  ;;  %v3858_v17 = vld [vmem:[%s4937_s1 + $0x528] sm:$0xff]  }
  0x7c   :  { %3430 = vmatprep.subr.bf16.mxu0 %v3813_v20  ;;  %v3861_v20 = vld [vmem:[%s4937_s1 + $0x560] sm:$0xff]  }
  0x7d   :  { %3451 = vmatpush3.bf16.msra.mxu1 %v3812_v19  ;;  %v3860_v19 = vld [vmem:[%s4937_s1 + $0x5a8] sm:$0xff]  }
  0x7e   :  { %3452 = vmatprep.subr.bf16.mxu1 %v3815_v22  ;;  %v3863_v22 = vld [vmem:[%s4937_s1 + $0x5e0] sm:$0xff]  }
  0x7f   :  { %3431 = vmatpush3.bf16.msra.mxu0 %v3814_v21  ;;  %v3862_v21 = vld [vmem:[%s4937_s1 + $0x520] sm:$0xff]  }
  0x80   :  { %3460 = vmatprep.subr.bf16.mxu0 %v3817_v28  ;;  %v3869_v28 = vld [vmem:[%s4937_s1 + $0x550] sm:$0xff]  }
  0x81   :  { %3453 = vmatpush3.bf16.msra.mxu1 %v3816_v25  ;;  %v3866_v25 = vld [vmem:[%s4937_s1 + $0x518] sm:$0xff]  }
  0x82   :  { %2483 = vmatmul.mubr.bf16.vlgmr.msra.gmra.mxu0 %v74_v27  ;;  %3482 = vmatprep.subr.bf16.mxu1 %v3819_v34  ;;  %v3868_v27 = vld [vmem:[%s4937_s1 + $0x598] sm:$0xff]   ;;  %v3875_v34 = vld [vmem:[%s4937_s1 + $0x5c8] sm:$0xff]  }
  0x83   :  { %3461 = vmatpush3.bf16.msra.mxu0 %v3818_v31  ;;  %2562 = vmatprep.mubr.bf16.mxu0 %v79_v0  ;;  %v3872_v31 = vld [vmem:[%s4937_s1 + $0x590] sm:$0xff]   ;;  %v3897_v0 = vld [vmem:[%s4937_s1 + $0x658] sm:$0xff]  }
  0x84   :  { %2523 = vmatmul.mubr.bf16.vlgmr.msra.gmra.mxu1 %v76_v33  ;;  %3462 = vmatprep.subr.bf16.mxu0 %v3821_v36  ;;  %v3874_v33 = vld [vmem:[%s4937_s1 + $0x508] sm:$0xff]   ;;  %v3877_v36 = vld [vmem:[%s4937_s1 + $0x540] sm:$0xff]  }
  0x85   :  { %3483 = vmatpush3.bf16.msra.mxu1 %v3820_v35  ;;  %2602 = vmatprep.mubr.bf16.mxu1 %v81_v6  ;;  %v3876_v35 = vld [vmem:[%s4937_s1 + $0x588] sm:$0xff]   ;;  %v3903_v6 = vld [vmem:[%s4937_s1 + $0x6d0] sm:$0xff]  }
  0x86   :  { %3484 = vmatprep.subr.bf16.mxu1 %v3823_v38  ;;  %v3879_v38 = vld [vmem:[%s4937_s1 + $0x5c0] sm:$0xff]  }
  0x87   :  { %3463 = vmatpush3.bf16.msra.mxu0 %v3822_v37  ;;  %v3878_v37 = vld [vmem:[%s4937_s1 + $0x500] sm:$0xff]  }
  0x88   :  { %3464 = vmatprep.subr.bf16.mxu0 %v3825_v40 }
  0x89   :  { %3485 = vmatpush3.bf16.msra.mxu1 %v3824_v39  ;;  %v50_v39 = vld [vmem:[%s4938_s0 + $0xa8] sm:$0xff] }
  0x8a   :  { %3486 = vmatprep.subr.bf16.mxu1 %v3827_v42  ;;  %v83_v40 = vpack.c.bf16 %v50_v39, %v50_v39  ;;  %v49_v42 = vld [vmem:[%s4938_s0 + $0xa0] sm:$0xff]  ;;  %v3916_v39 = vld [vmem:[%s4937_s1 + $0x7b8] sm:$0xff]  }
  0x8b   :  { %3465 = vmatpush3.bf16.msra.mxu0 %v3826_v41  ;;  %v3880_v41 = vld [vmem:[%s4937_s1 + $0x580] sm:$0xff]  }
  0x8c   :  { %3466 = vmatprep.subr.bf16.mxu0 %v3829_v44  ;;  %v3881_v44 = vld [vmem:[%s4937_s1 + $0x678] sm:$0xff]  }
  0x8d   :  { %3487 = vmatpush3.bf16.msra.mxu1 %v3828_v43  ;;  %v82_v43 = vpack.c.bf16 %v49_v42, %v49_v42  ;;  %v3918_v42 = vld [vmem:[%s4937_s1 + $0x730] sm:$0xff]  }
  0x8e   :  { %3488 = vmatprep.subr.bf16.mxu1 %v3831_v46 }
  0x8f   :  { %3467 = vmatpush3.bf16.msra.mxu0 %v3830_v45  ;;  %v52_v45 = vld [vmem:[%s4938_s0 + $0xb8] sm:$0xff] }
  0x90   :  { %3468 = vmatprep.subr.bf16.mxu0 %v3833_v48  ;;  %v85_v46 = vpack.c.bf16 %v52_v45, %v52_v45  ;;  %v51_v48 = vld [vmem:[%s4938_s0 + $0xb0] sm:$0xff]  ;;  %v3921_v45 = vld [vmem:[%s4937_s1 + $0x768] sm:$0xff]  }
  0x91   :  { %3489 = vmatpush3.bf16.msra.mxu1 %v3832_v47  ;;  %v3882_v47 = vld [vmem:[%s4937_s1 + $0x638] sm:$0xff]  }
  0x92   :  { %3490 = vmatprep.subr.bf16.mxu1 %v3835_v50  ;;  %v3883_v50 = vld [vmem:[%s4937_s1 + $0x6f8] sm:$0xff]  }
  0x93   :  { %3469 = vmatpush3.bf16.msra.mxu0 %v3834_v49  ;;  %v84_v49 = vpack.c.bf16 %v51_v48, %v51_v48  ;;  %v3924_v48 = vld [vmem:[%s4937_s1 + $0x7a8] sm:$0xff]  }
  0x94   :  { %3470 = vmatprep.subr.bf16.mxu0 %v3837_v52  ;;  %v3885_v52 = vld [vmem:[%s4937_s1 + $0x670] sm:$0xff]  }
  0x95   :  { %3491 = vmatpush3.bf16.msra.mxu1 %v3836_v51  ;;  %v3884_v51 = vld [vmem:[%s4937_s1 + $0x6b8] sm:$0xff]  }
  0x96   :  { %3492 = vmatprep.subr.bf16.mxu1 %v3839_v54  ;;  %v3887_v54 = vld [vmem:[%s4937_s1 + $0x6f0] sm:$0xff]  }
  0x97   :  { %3471 = vmatpush3.bf16.msra.mxu0 %v3838_v53  ;;  %v3886_v53 = vld [vmem:[%s4937_s1 + $0x630] sm:$0xff]  }
  0x98   :  { %3472 = vmatprep.subr.bf16.mxu0 %v3841_v56  ;;  %v3889_v56 = vld [vmem:[%s4937_s1 + $0x668] sm:$0xff]  }
  0x99   :  { %3493 = vmatpush3.bf16.msra.mxu1 %v3840_v55  ;;  %v3888_v55 = vld [vmem:[%s4937_s1 + $0x6b0] sm:$0xff]  }
  0x9a   :  { %3494 = vmatprep.subr.bf16.mxu1 %v3843_v58  ;;  %v3891_v58 = vld [vmem:[%s4937_s1 + $0x6e8] sm:$0xff]  }
  0x9b   :  { %3473 = vmatpush3.bf16.msra.mxu0 %v3842_v57  ;;  %v3890_v57 = vld [vmem:[%s4937_s1 + $0x628] sm:$0xff]  }
  0x9c   :  { %3474 = vmatprep.subr.bf16.mxu0 %v3845_v60  ;;  %v3893_v60 = vld [vmem:[%s4937_s1 + $0x660] sm:$0xff]  }
  0x9d   :  { %3495 = vmatpush3.bf16.msra.mxu1 %v3844_v59  ;;  %v3892_v59 = vld [vmem:[%s4937_s1 + $0x6a8] sm:$0xff]  }
  0x9e   :  { %3496 = vmatprep.subr.bf16.mxu1 %v3847_v62  ;;  %v3895_v62 = vld [vmem:[%s4937_s1 + $0x6e0] sm:$0xff]  }
  0x9f   :  { %3475 = vmatpush3.bf16.msra.mxu0 %v3846_v61  ;;  %v3894_v61 = vld [vmem:[%s4937_s1 + $0x620] sm:$0xff]  }
  0xa0   :  { %3504 = vmatprep.subr.bf16.mxu0 %v3849_v4  ;;  %v3901_v4 = vld [vmem:[%s4937_s1 + $0x650] sm:$0xff]  }
  0xa1   :  { %3497 = vmatpush3.bf16.msra.mxu1 %v3848_v1  ;;  %v3898_v1 = vld [vmem:[%s4937_s1 + $0x618] sm:$0xff]  }
  0xa2   :  { %2563 = vmatmul.mubr.bf16.vlgmr.msra.gmra.mxu0 %v78_v3  ;;  %3526 = vmatprep.subr.bf16.mxu1 %v3851_v10  ;;  %v3900_v3 = vld [vmem:[%s4937_s1 + $0x698] sm:$0xff]   ;;  %v3907_v10 = vld [vmem:[%s4937_s1 + $0x6c8] sm:$0xff]  }
  0xa3   :  { %3505 = vmatpush3.bf16.msra.mxu0 %v3850_v7  ;;  %2642 = vmatprep.mubr.bf16.mxu0 %v83_v40  ;;  %v3904_v7 = vld [vmem:[%s4937_s1 + $0x690] sm:$0xff]  }
  0xa4   :  { %2603 = vmatmul.mubr.bf16.vlgmr.msra.gmra.mxu1 %v80_v9  ;;  %3506 = vmatprep.subr.bf16.mxu0 %v3853_v12  ;;  %v3906_v9 = vld [vmem:[%s4937_s1 + $0x608] sm:$0xff]  }
  0xa5   :  { %3527 = vmatpush3.bf16.msra.mxu1 %v3852_v11  ;;  %2682 = vmatprep.mubr.bf16.mxu1 %v85_v46  ;;  %v3908_v11 = vld [vmem:[%s4937_s1 + $0x688] sm:$0xff]  }
  0xa6   :  { %3528 = vmatprep.subr.bf16.mxu1 %v3855_v14  ;;  %v3910_v14 = vld [vmem:[%s4937_s1 + $0x600] sm:$0xff]   ;;  %v3922_v46 = vld [vmem:[%s4937_s1 + $0x728] sm:$0xff]  }
  0xa7   :  { %3507 = vmatpush3.bf16.msra.mxu0 %v3854_v13  ;;  %v3909_v13 = vld [vmem:[%s4937_s1 + $0x640] sm:$0xff]  }
  0xa8   :  { %3508 = vmatprep.subr.bf16.mxu0 %v3857_v16  ;;  %v3911_v16 = vld [vmem:[%s4937_s1 + $0x6c0] sm:$0xff]  }
  0xa9   :  { %3529 = vmatpush3.bf16.msra.mxu1 %v3856_v15 }
  0xaa   :  { %3530 = vmatprep.subr.bf16.mxu1 %v3859_v18 }
  0xab   :  { %3509 = vmatpush3.bf16.msra.mxu0 %v3858_v17 }
  0xac   :  { %3510 = vmatprep.subr.bf16.mxu0 %v3861_v20 }
  0xad   :  { %3531 = vmatpush3.bf16.msra.mxu1 %v3860_v19  ;;  %v54_v19 = vld [vmem:[%s4938_s0 + $0xc8] sm:$0xff] }
  0xae   :  { %3532 = vmatprep.subr.bf16.mxu1 %v3863_v22  ;;  %v3912_v22 = vld [vmem:[%s4937_s1 + $0x680] sm:$0xff]  }
  0xaf   :  { %3511 = vmatpush3.bf16.msra.mxu0 %v3862_v21  ;;  %v87_v21 = vpack.c.bf16 %v54_v19, %v54_v19 }
  0xb0   :  { %3512 = vmatprep.subr.bf16.mxu0 %v3865_v24 }
  0xb1   :  { %3533 = vmatpush3.bf16.msra.mxu1 %v3864_v23  ;;  %v53_v23 = vld [vmem:[%s4938_s0 + $0xc0] sm:$0xff] }
  0xb2   :  { %3534 = vmatprep.subr.bf16.mxu1 %v3867_v26  ;;  %v3913_v26 = vld [vmem:[%s4937_s1 + $0x778] sm:$0xff]  }
  0xb3   :  { %3513 = vmatpush3.bf16.msra.mxu0 %v3866_v25  ;;  %v86_v25 = vpack.c.bf16 %v53_v23, %v53_v23 }
  0xb4   :  { %3514 = vmatprep.subr.bf16.mxu0 %v3869_v28 }
  0xb5   :  { %3535 = vmatpush3.bf16.msra.mxu1 %v3868_v27  ;;  %v56_v27 = vld [vmem:[%s4938_s0 + $0xd8] sm:$0xff] }
  0xb6   :  { %3536 = vmatprep.subr.bf16.mxu1 %v3871_v30  ;;  %v89_v30 = vpack.c.bf16 %v56_v27, %v56_v27 }
  0xb7   :  { %3515 = vmatpush3.bf16.msra.mxu0 %v3870_v29 }
  0xb8   :  { %3516 = vmatprep.subr.bf16.mxu0 %v3873_v32 }
  0xb9   :  { %3537 = vmatpush3.bf16.msra.mxu1 %v3872_v31  ;;  %v3914_v31 = vld [vmem:[%s4937_s1 + $0x738] sm:$0xff]  }
  0xba   :  { %3538 = vmatprep.subr.bf16.mxu1 %v3875_v34  ;;  %v55_v34 = vld [vmem:[%s4938_s0 + $0xd0] sm:$0xff] }
  0xbb   :  { %3517 = vmatpush3.bf16.msra.mxu0 %v3874_v33  ;;  %v3014_v33 = vld [vmem:[%s4939_s2] ss:$0 sm:$0xff] }
  0xbc   :  { %3518 = vmatprep.subr.bf16.mxu0 %v3877_v36  ;;  %v88_v36 = vpack.c.bf16 %v55_v34, %v55_v34  ;;  %v61_v34 = vld [vmem:[%s4938_s0 + $0x100] sm:$0xff] }
  0xbd   :  { %3539 = vmatpush3.bf16.msra.mxu1 %v3876_v35 }
  0xbe   :  { %3540 = vmatprep.subr.bf16.mxu1 %v3879_v38 }
  0xbf   :  { %3519 = vmatpush3.bf16.msra.mxu0 %v3878_v37  ;;  %v3915_v37 = vld [vmem:[%s4937_s1 + $0x7f8] sm:$0xff]  }
  0xc0   :  { %3548 = vmatprep.subr.bf16.mxu0 %v3881_v44  ;;  %v3920_v44 = vld [vmem:[%s4937_s1 + $0x7b0] sm:$0xff]  }
  0xc1   :  { %3541 = vmatpush3.bf16.msra.mxu1 %v3880_v41  ;;  %v3917_v41 = vld [vmem:[%s4937_s1 + $0x770] sm:$0xff]  }
  0xc2   :  { %2643 = vmatmul.mubr.bf16.vlgmr.msra.gmra.mxu0 %v82_v43  ;;  %3570 = vmatprep.subr.bf16.mxu1 %v3883_v50  ;;  %v3919_v43 = vld [vmem:[%s4937_s1 + $0x7f0] sm:$0xff]   ;;  %v3926_v50 = vld [vmem:[%s4937_s1 + $0x720] sm:$0xff]  }
  0xc3   :  { %3549 = vmatpush3.bf16.msra.mxu0 %v3882_v47  ;;  %2722 = vmatprep.mubr.bf16.mxu0 %v87_v21  ;;  %v3923_v47 = vld [vmem:[%s4937_s1 + $0x7e8] sm:$0xff]   ;;  %v3945_v21 = vld [vmem:[%s4937_s1 + $0x830] ss:$0 sps:$4 sm:$0xff]  }
  0xc4   :  { %2683 = vmatmul.mubr.bf16.vlgmr.msra.gmra.mxu1 %v84_v49  ;;  %3550 = vmatprep.subr.bf16.mxu0 %v3885_v52  ;;  %v3925_v49 = vld [vmem:[%s4937_s1 + $0x760] sm:$0xff]  }
  0xc5   :  { %3571 = vmatpush3.bf16.msra.mxu1 %v3884_v51  ;;  %2762 = vmatprep.mubr.bf16.mxu1 %v89_v30  ;;  %v3927_v51 = vld [vmem:[%s4937_s1 + $0x7e0] sm:$0xff]   ;;  %v3948_v30 = vld [vmem:[%s4937_s1 + $0x818] sm:$0xff]  }
  0xc6   :  { %3572 = vmatprep.subr.bf16.mxu1 %v3887_v54  ;;  %v3928_v52 = vld [vmem:[%s4937_s1 + $0x7a0] sm:$0xff]   ;;  %v3930_v54 = vld [vmem:[%s4937_s1 + $0x718] sm:$0xff]  }
  0xc7   :  { %3551 = vmatpush3.bf16.msra.mxu0 %v3886_v53  ;;  %v3929_v53 = vld [vmem:[%s4937_s1 + $0x758] sm:$0xff]  }
  0xc8   :  { %3552 = vmatprep.subr.bf16.mxu0 %v3889_v56  ;;  %v3932_v56 = vld [vmem:[%s4937_s1 + $0x798] sm:$0xff]  }
  0xc9   :  { %3573 = vmatpush3.bf16.msra.mxu1 %v3888_v55  ;;  %v3931_v55 = vld [vmem:[%s4937_s1 + $0x7d8] sm:$0xff]  }
  0xca   :  { %3574 = vmatprep.subr.bf16.mxu1 %v3891_v58  ;;  %v3934_v58 = vld [vmem:[%s4937_s1 + $0x710] sm:$0xff]  }
  0xcb   :  { %3553 = vmatpush3.bf16.msra.mxu0 %v3890_v57  ;;  %v3933_v57 = vld [vmem:[%s4937_s1 + $0x750] sm:$0xff]  }
  0xcc   :  { %3554 = vmatprep.subr.bf16.mxu0 %v3893_v60  ;;  %v3936_v60 = vld [vmem:[%s4937_s1 + $0x790] sm:$0xff]  }
  0xcd   :  { %3575 = vmatpush3.bf16.msra.mxu1 %v3892_v59  ;;  %v3935_v59 = vld [vmem:[%s4937_s1 + $0x7d0] sm:$0xff]  }
  0xce   :  { %3576 = vmatprep.subr.bf16.mxu1 %v3895_v62  ;;  %v3938_v62 = vld [vmem:[%s4937_s1 + $0x708] sm:$0xff]  }
  0xcf   :  { %3555 = vmatpush3.bf16.msra.mxu0 %v3894_v61  ;;  %v3937_v61 = vld [vmem:[%s4937_s1 + $0x748] sm:$0xff]  }
  0xd0   :  { %3556 = vmatprep.subr.bf16.mxu0 %v3897_v0 }
  0xd1   :  { %3577 = vmatpush3.bf16.msra.mxu1 %v3896_v63  ;;  %v3939_v63 = vld [vmem:[%s4937_s1 + $0x7c8] sm:$0xff]  }
  0xd2   :  { %3578 = vmatprep.subr.bf16.mxu1 %v3899_v2  ;;  %v3941_v2 = vld [vmem:[%s4937_s1 + $0x740] sm:$0xff]  }
  0xd3   :  { %3557 = vmatpush3.bf16.msra.mxu0 %v3898_v1  ;;  %v3940_v1 = vld [vmem:[%s4937_s1 + $0x788] sm:$0xff]  }
  0xd4   :  { %3558 = vmatprep.subr.bf16.mxu0 %v3901_v4  ;;  %v3942_v4 = vld [vmem:[%s4937_s1 + $0x700] sm:$0xff]  }
  0xd5   :  { %3579 = vmatpush3.bf16.msra.mxu1 %v3900_v3 }
  0xd6   :  { %3580 = vmatprep.subr.bf16.mxu1 %v3903_v6 }
  0xd7   :  { %3559 = vmatpush3.bf16.msra.mxu0 %v3902_v5 }
  0xd8   :  { %3560 = vmatprep.subr.bf16.mxu0 %v3905_v8  ;;  %v58_v8 = vld [vmem:[%s4938_s0 + $0xe8] sm:$0xff] }
  0xd9   :  { %3581 = vmatpush3.bf16.msra.mxu1 %v3904_v7  ;;  %v3943_v7 = vld [vmem:[%s4937_s1 + $0x7c0] sm:$0xff]  }
  0xda   :  { %3582 = vmatprep.subr.bf16.mxu1 %v3907_v10  ;;  %v91_v10 = vpack.c.bf16 %v58_v8, %v58_v8 }
  0xdb   :  { %3561 = vmatpush3.bf16.msra.mxu0 %v3906_v9 }
  0xdc   :  { %3562 = vmatprep.subr.bf16.mxu0 %v3909_v13 }
  0xdd   :  { %3583 = vmatpush3.bf16.msra.mxu1 %v3908_v11  ;;  %v3944_v11 = vld [vmem:[%s4937_s1 + $0x780] sm:$0xff]  }
  0xde   :  { %3584 = vmatprep.subr.bf16.mxu1 %v3911_v16  ;;  %v60_v16 = vld [vmem:[%s4938_s0 + $0xf8] sm:$0xff] }
  0xdf   :  { %3563 = vmatpush3.bf16.msra.mxu0 %v3910_v14  ;;  %v57_v14 = vld [vmem:[%s4938_s0 + $0xe0] sm:$0xff] }
  0xe0   :  { %3592 = vmatprep.subr.bf16.mxu0 %v3913_v26  ;;  %v90_v19 = vpack.c.bf16 %v57_v14, %v57_v14  ;;  %v2208_v26 = vsel %vm2206_vm0, %v3945_v21, 0 }
  0xe1   :  { %3585 = vmatpush3.bf16.msra.mxu1 %v3912_v22  ;;  %v59_v22 = vld [vmem:[%s4938_s0 + $0xf0] sm:$0xff] }
  0xe2   :  { %v3300_v12 = vpop.f32.mrf.mxu0  ;;  %2723 = vmatmul.mubr.bf16.vlgmr.msra.gmra.mxu0 %v86_v25  ;;  %3614 = vmatprep.subr.bf16.mxu1 %v3915_v37 }
  0xe3   :  { %3593 = vmatpush3.bf16.msra.mxu0 %v3914_v31  ;;  %2802 = vmatprep.mubr.bf16.mxu0 %v91_v10  ;;  %v3949_v31 = vld [vmem:[%s4937_s1 + $0x810] sm:$0xff]  }
  0xe4   :  { %v3301_v15 = vpop.f32.mrf.mxu0  ;;  %v3322_v18 = vpop.f32.mrf.mxu1  ;;  %2763 = vmatmul.mubr.bf16.vlgmr.msra.gmra.mxu1 %v88_v36  ;;  %3594 = vmatprep.subr.bf16.mxu0 %v3917_v41 }
  0xe5   :  { %v3302_v17 = vadd.f32 %v3301_v15, %v3300_v12  ;;  %3615 = vmatpush3.bf16.msra.mxu1 %v3916_v39  ;;  %v3952_v15 = vmov 0.0  }
  0xe6   :  { %v3303_v20 = vpop.f32.mrf.mxu0  ;;  %v3323_v24 = vpop.f32.mrf.mxu1  ;;  %3616 = vmatprep.subr.bf16.mxu1 %v3919_v43 }
  0xe7   :  { %v3324_v28 = vadd.f32 %v3323_v24, %v3322_v18  ;;  %v2245_v35 = vadd.f32 %v3302_v17, %v3014_v33  ;;  %3595 = vmatpush3.bf16.msra.mxu0 %v3918_v42  ;;  %v93_v20 = vpack.c.bf16 %v60_v16, %v60_v16  ;;  %v92_v24 = vpack.c.bf16 %v59_v22, %v59_v22  ;;  %v3951_v33 = vld [vmem:[%s4937_s1 + $0x800] sm:$0xff]  }
  0xe8   :  { %v3304_v29 = vpop.f32.mrf.mxu0  ;;  %v3325_v32 = vpop.f32.mrf.mxu1  ;;  %3596 = vmatprep.subr.bf16.mxu0 %v3921_v45 }
  0xe9   :  { %v4765_v40 = vadd.f32 %v3324_v28, %v2245_v35  ;;  %3617 = vmatpush3.bf16.msra.mxu1 %v3920_v44  ;;  %2842 = vmatprep.mubr.bf16.mxu1 %v93_v20  ;;  %v3946_v28 = vld [vmem:[%s4937_s1 + $0x828] sm:$0xff]   ;;  %v3947_v29 = vld [vmem:[%s4937_s1 + $0x820] sm:$0xff]   ;;  %v94_v35 = vpack.c.bf16 %v61_v34, %v61_v34 }
  0xea   :  { %v3326_v38 = vpop.f32.mrf.mxu1  ;;  %3618 = vmatprep.subr.bf16.mxu1 %v3923_v47  ;;  %v3950_v32 = vld [vmem:[%s4937_s1 + $0x808] sm:$0xff]  }
  0xeb   :  { %3597 = vmatpush3.bf16.msra.mxu0 %v3922_v46 }
  0xec   :  { %3598 = vmatprep.subr.bf16.mxu0 %v3925_v49 }
  0xed   :  { %3619 = vmatpush3.bf16.msra.mxu1 %v3924_v48 }
  0xee   :  { %3620 = vmatprep.subr.bf16.mxu1 %v3927_v51 }
  0xef   :  { %3599 = vmatpush3.bf16.msra.mxu0 %v3926_v50 }
  0xf0   :  { %3600 = vmatprep.subr.bf16.mxu0 %v3929_v53 }
  0xf1   :  { %3621 = vmatpush3.bf16.msra.mxu1 %v3928_v52 }
  0xf2   :  { %3622 = vmatprep.subr.bf16.mxu1 %v3931_v55 }
  0xf3   :  { %3601 = vmatpush3.bf16.msra.mxu0 %v3930_v54 }
  0xf4   :  { %3602 = vmatprep.subr.bf16.mxu0 %v3933_v57 }
  0xf5   :  { %3623 = vmatpush3.bf16.msra.mxu1 %v3932_v56 }
  0xf6   :  { %3624 = vmatprep.subr.bf16.mxu1 %v3935_v59 }
  0xf7   :  { %3603 = vmatpush3.bf16.msra.mxu0 %v3934_v58 }
  0xf8   :  { %3604 = vmatprep.subr.bf16.mxu0 %v3937_v61  ;;  %v2898_v61 = vld [vmem:[%s4940_s3 + $0x28] sm:$0xff] }
  0xf9   :  { %3625 = vmatpush3.bf16.msra.mxu1 %v3936_v60  ;;  %v2899_v60 = vld [vmem:[%s4940_s3 + $0x30] sm:$0x3] }
  0xfa   :  { %3626 = vmatprep.subr.bf16.mxu1 %v3939_v63  ;;  %v2896_v63 = vld [vmem:[%s4940_s3 + $0x18] sm:$0xff] }
  0xfb   :  { %3605 = vmatpush3.bf16.msra.mxu0 %v3938_v62  ;;  %v2897_v62 = vld [vmem:[%s4940_s3 + $0x20] sm:$0xff] }
  0xfc   :  { %3606 = vmatprep.subr.bf16.mxu0 %v3941_v2 }
  0xfd   :  { %3627 = vmatpush3.bf16.msra.mxu1 %v3940_v1  ;;  %v2895_v1 = vld [vmem:[%s4940_s3 + $0x10] sm:$0xff] }
  0xfe   :  { %3628 = vmatprep.subr.bf16.mxu1 %v3943_v7 }
  0xff   :  { %3607 = vmatpush3.bf16.msra.mxu0 %v3942_v4 }
 0x100   :  { %3652 = vmatprep.subr.bf16.mxu0 %v3952_v15 }
 0x101   :  { %3629 = vmatpush3.bf16.msra.mxu1 %v3944_v11 }
 0x102   :  { %v3344_v0 = vpop.f32.mrf.mxu0  ;;  %3670 = vmatprep.subr.mxu1 %v3952_v15  ;;  %2803 = vmatmul.mubr.bf16.vlgmr.msra.gmra.mxu0 %v90_v19 }
 0x103   :  { %3653 = vmatpush3.bf16.msra.mxu0 %v2208_v26  ;;  %3666 = vmatprep.mubr.msk.bf16.mxu0 %vm3953_vm1, %v3952_v15 }
 0x104   :  { %v3345_v3 = vpop.f32.mrf.mxu0  ;;  %v3366_v6 = vpop.f32.mrf.mxu1  ;;  %2843 = vmatmul.mubr.bf16.vlgmr.msra.gmra.mxu1 %v92_v24  ;;  %3654 = vmatprep.subr.bf16.mxu0 %v3952_v15 }
 0x105   :  { %v3346_v5 = vadd.f32 %v3345_v3, %v3344_v0  ;;  %3684 = vmatprep.mubr.msk.f32.mxu1 %vm3953_vm1, %v3952_v15  ;;  %3671 = vmatpush3.msk.msra.mxu1 %vm2911_vm3, %v2899_v60 }
 0x106   :  { %v3347_v9 = vpop.f32.mrf.mxu0  ;;  %v3367_v13 = vpop.f32.mrf.mxu1  ;;  %3672 = vmatprep.subr.mxu1 %v3952_v15 }
 0x107   :  { %v2325_v12 = vadd.f32 %v3346_v5, %v4765_v40  ;;  %v3368_v17 = vadd.f32 %v3367_v13, %v3366_v6  ;;  %3655 = vmatpush3.bf16.msra.mxu0 %v3946_v28  ;;  %3673 = vmatpush3.msra.mxu1 %v2898_v61  ;;  %v2894_v5 = vld [vmem:[%s4940_s3 + $0x8] sm:$0xff]  ;;  %v2893_v9 = vld [vmem:[%s4940_s3] sm:$0xff] }
 0x108   :  { %v3348_v18 = vpop.f32.mrf.mxu0  ;;  %v3369_v23 = vpop.f32.mrf.mxu1  ;;  %3656 = vmatprep.subr.bf16.mxu0 %v3952_v15  ;;  %3674 = vmatprep.subr.mxu1 %v3952_v15 }
 0x109   :  { %v2365_v25 = vadd.f32 %v3368_v17, %v2325_v12  ;;  %3675 = vmatpush3.msra.mxu1 %v2897_v62 }
 0x10a   :  { %v3370_v27 = vpop.f32.mrf.mxu1  ;;  %3676 = vmatprep.subr.mxu1 %v3952_v15 }
 0x10b   :  { %3657 = vmatpush3.bf16.msra.mxu0 %v3947_v29  ;;  %3677 = vmatpush3.msra.mxu1 %v2896_v63 }
 0x10c   :  { %3658 = vmatprep.subr.bf16.mxu0 %v3952_v15  ;;  %3678 = vmatprep.subr.mxu1 %v3952_v15 }
 0x10d   :  { %3679 = vmatpush3.msra.mxu1 %v2895_v1 }
 0x10e   :  { %3680 = vmatprep.subr.mxu1 %v3952_v15 }
 0x10f   :  { %3659 = vmatpush3.bf16.msra.mxu0 %v3948_v30  ;;  %3681 = vmatpush3.msra.mxu1 %v2894_v5 }
 0x110   :  { %3660 = vmatprep.subr.bf16.mxu0 %v3952_v15  ;;  %3682 = vmatprep.subr.mxu1 %v3952_v15 }
 0x111   :  { %3683 = vmatpush3.msra.mxu1 %v2893_v9 }
 0x113   :  { %3661 = vmatpush3.bf16.msra.mxu0 %v3949_v31 }
 0x114   :  { %3662 = vmatprep.subr.bf16.mxu0 %v3952_v15 }
 0x117   :  { %3663 = vmatpush3.bf16.msra.mxu0 %v3950_v32 }
 0x118   :  { %3664 = vmatprep.subr.bf16.mxu0 %v3952_v15 }
 0x11b   :  { %3665 = vmatpush3.bf16.msra.mxu0 %v3951_v33 }
 0x11e   :  { %3667 = vmatmul.mubr.msk.bf16.vlgmr.msra.gmra.mxu0 %vm2202_vm2, %v94_v35 }
 0x122   :  { %v3388_v36 = vpop.f32.mrf.mxu0 }
 0x124   :  { %v3389_v37 = vpop.f32.mrf.mxu0  ;;  %v3410_v38 = vpop.f32.mrf.mxu1 }
 0x125   :  { %v3390_v39 = vadd.f32 %v3389_v37, %v3388_v36 }
 0x126   :  { %v3391_v40 = vpop.f32.mrf.mxu0  ;;  %v3411_v41 = vpop.f32.mrf.mxu1 }
 0x127   :  { %v2405_v42 = vadd.f32 %v3390_v39, %v2365_v25  ;;  %v3412_v43 = vadd.f32 %v3411_v41, %v3410_v38 }
 0x128   :  { %v3392_v44 = vpop.f32.mrf.mxu0  ;;  %v3413_v45 = vpop.f32.mrf.mxu1 }
 0x129   :  { %v2445_v46 = vadd.f32 %v3412_v43, %v2405_v42 }
 0x12a   :  { %v3414_v47 = vpop.f32.mrf.mxu1 }
 0x142   :  { %v3432_v48 = vpop.f32.mrf.mxu0 }
 0x144   :  { %v3433_v49 = vpop.f32.mrf.mxu0  ;;  %v3454_v51 = vpop.f32.mrf.mxu1 }
 0x145   :  { %v3434_v50 = vadd.f32 %v3433_v49, %v3432_v48 }
 0x146   :  { %v3435_v52 = vpop.f32.mrf.mxu0  ;;  %v3455_v54 = vpop.f32.mrf.mxu1 }
 0x147   :  { %v2485_v53 = vadd.f32 %v3434_v50, %v2445_v46  ;;  %v3456_v55 = vadd.f32 %v3455_v54, %v3454_v51 }
 0x148   :  { %v3436_v56 = vpop.f32.mrf.mxu0  ;;  %v3457_v57 = vpop.f32.mrf.mxu1 }
 0x149   :  { %v2525_v58 = vadd.f32 %v3456_v55, %v2485_v53 }
 0x14a   :  { %v3458_v59 = vpop.f32.mrf.mxu1 }
 0x14b   :  { %v3279_v59 = vld [vmem:[%s4942_s4] ss:$0 sm:$0xff] }
 0x162   :  { %v3476_v0 = vpop.f32.mrf.mxu0 }
 0x164   :  { %v3477_v2 = vpop.f32.mrf.mxu0  ;;  %v3498_v4 = vpop.f32.mrf.mxu1 }
 0x165   :  { %v3478_v3 = vadd.f32 %v3477_v2, %v3476_v0  ;;  %v3282_v0 = vld [vmem:[%s4943_s5] ss:$0 sm:$0xff] }
 0x166   :  { %v3479_v6 = vpop.f32.mrf.mxu0  ;;  %v3499_v8 = vpop.f32.mrf.mxu1 }
 0x167   :  { %v2565_v7 = vadd.f32 %v3478_v3, %v2525_v58  ;;  %v3500_v10 = vadd.f32 %v3499_v8, %v3498_v4  ;;  %v12_v58 = vstv %s4941_s6 }
 0x168   :  { %v3480_v11 = vpop.f32.mrf.mxu0  ;;  %v3501_v12 = vpop.f32.mrf.mxu1  ;;  %13 = vst [vmem:[#allocation2] sm:$0x1] %v12_v58 }
 0x169   :  { %v2605_v13 = vadd.f32 %v3500_v10, %v2565_v7 }
 0x16a   :  { %v3502_v14 = vpop.f32.mrf.mxu1 }
 0x16f   :  { %v3283_v4 = vld [vmem:[#allocation2] ss:$0 sm:$0xff] }
 0x182   :  { %v3520_v16 = vpop.f32.mrf.mxu0 }
 0x184   :  { %v3521_v17 = vpop.f32.mrf.mxu0  ;;  %v3542_v18 = vpop.f32.mrf.mxu1 }
 0x185   :  { %v3522_v19 = vadd.f32 %v3521_v17, %v3520_v16 }
 0x186   :  { %v3523_v20 = vpop.f32.mrf.mxu0  ;;  %v3543_v21 = vpop.f32.mrf.mxu1 }
 0x187   :  { %v2645_v22 = vadd.f32 %v3522_v19, %v2605_v13  ;;  %v3544_v23 = vadd.f32 %v3543_v21, %v3542_v18 }
 0x188   :  { %v3524_v24 = vpop.f32.mrf.mxu0  ;;  %v3545_v15 = vpop.f32.mrf.mxu1 }
 0x189   :  { %v2685_v25 = vadd.f32 %v3544_v23, %v2645_v22 }
 0x18a   :  { %v3546_v26 = vpop.f32.mrf.mxu1 }
 0x1a2   :  { %v3564_v27 = vpop.f32.mrf.mxu0 }
 0x1a4   :  { %v3565_v28 = vpop.f32.mrf.mxu0  ;;  %v3586_v29 = vpop.f32.mrf.mxu1 }
 0x1a5   :  { %v3566_v43 = vadd.f32 %v3565_v28, %v3564_v27 }
 0x1a6   :  { %v3567_v30 = vpop.f32.mrf.mxu0  ;;  %v3587_v31 = vpop.f32.mrf.mxu1 }
 0x1a7   :  { %v2725_v44 = vadd.f32 %v3566_v43, %v2685_v25  ;;  %v3588_v45 = vadd.f32 %v3587_v31, %v3586_v29 }
 0x1a8   :  { %v3568_v32 = vpop.f32.mrf.mxu0  ;;  %v3589_v33 = vpop.f32.mrf.mxu1 }
 0x1a9   :  { %v2765_v47 = vadd.f32 %v3588_v45, %v2725_v44 }
 0x1aa   :  { %v3590_v34 = vpop.f32.mrf.mxu1 }
 0x1c2   :  { %v3608_v35 = vpop.f32.mrf.mxu0 }
 0x1c4   :  { %v3630_v36 = vpop.f32.mrf.mxu1  ;;  %v3609_v37 = vpop.f32.mrf.mxu0 }
 0x1c5   :  { %v3610_v46 = vadd.f32 %v3609_v37, %v3608_v35 }
 0x1c6   :  { %v3631_v38 = vpop.f32.mrf.mxu1  ;;  %v3611_v39 = vpop.f32.mrf.mxu0 }
 0x1c7   :  { %v2805_v48 = vadd.f32 %v3610_v46, %v2765_v47  ;;  %v3632_v49 = vadd.f32 %v3631_v38, %v3630_v36 }
 0x1c8   :  { %v3633_v40 = vpop.f32.mrf.mxu1  ;;  %v3612_v41 = vpop.f32.mrf.mxu0 }
 0x1c9   :  { %v2845_v50 = vadd.f32 %v3632_v49, %v2805_v48 }
 0x1ca   :  { %v3634_v42 = vpop.f32.mrf.mxu1 }
 0x1de   :  { %v2884_v51 = vpop.f32.mrf.mxu0 }
 0x1df   :  { %v2885_v52 = vadd.f32 %v2884_v51, %v2845_v50 }
 0x1e0   :  { %v3668_v53 = vpop.f32.mrf.mxu0 }
 0x1e1   :  { %vm2890_vm4 = vcmp.ge.f32.partialorder %v2885_v52, 0.0  ;;  %v2891_v54 = vmul.f32 0.01, %v2885_v52 }
 0x1e2   :  { %v2887_v55 = vpop.f32.mrf.mxu0 }
 0x1e3   :  { %v2892_v56 = vsel %vm2890_vm4, %v2885_v52, %v2891_v54 }
 0x1e4   :  { %v3669_v57 = vpop.f32.mrf.mxu0  ;;  %3685 = vmatmul.mubr.msk.f32.vlgmr.msra.gmra.mxu1 %vm2907_vm5, %v2892_v56 }
 0x2a4   :  { %v2981_v60 = vpop.f32.mrf.mxu1 }
 0x2a5   :  { %v2982_v61 = vadd.f32 %v3279_v59, %v2981_v60 }
 0x2a6   :  { %v3686_v62 = vpop.f32.mrf.mxu1 }
 0x2a7   :  { %v2986_v63 = vmul.f32 0.01, %v2982_v61  ;;  %vm2985_vm6 = vcmp.ge.f32.partialorder %v2982_v61, 0.0 }
 0x2a9   :  { %v2987_v1 = vsel %vm2985_vm6, %v2982_v61, %v2986_v63 }
 0x2aa   :  { %v2995_v2 = vmul.f32 %v3282_v0, %v2987_v1 }
 0x2ac   :  { %v2997_v3 = vsel %vm2996_vm7, %v2995_v2, 0.0 }
 0x2ad   :  { %2998 = vadd.xlane.f32.xlu0 %v2997_v3 }
 0x336   :  { %v2999_v5 = vpop.xlane.xlu0 %2998 }
 0x337   :  { %v3007_v6 = vadd.f32 %v3283_v4, %v2999_v5 }
 0x339   :  { %3009 = vst.msk [vmem:[%s4944_s7] sm:$0xff] %vm3008_vm8, %v3007_v6 }

</bundles_post_ra>
